<compile_context>
chip_gen: v6e
topology: v6e:2x2x1
jax: 0.10.0
libtpu: 0.0.40
codegen_flags: <defaults>
</compile_context>

<pallas_src>
import functools

import jax
import jax.numpy as jnp
from jax import lax
from jax.experimental import pallas as pl
from jax.experimental.pallas import tpu as pltpu


def conv_gn_relu_kernel(x_ref, w_ref, p_ref, o_ref, *, num_groups, eps):
    # x_ref: (1, C_in, T)          input slab for one batch element
    # w_ref: (C_out, K*C_in)       im2col-reshaped conv weight
    # p_ref: (G, gs, 3)            packed [bias, gamma, beta] per channel
    # o_ref: (1, C_out, T)
    C_in = x_ref.shape[1]
    T = x_ref.shape[2]
    C_out = w_ref.shape[0]
    K = w_ref.shape[1] // C_in
    pad = (K - 1) // 2
    G = num_groups
    gs = C_out // G

    x = x_ref[0]                                            # (C_in, T)

    # ---- build stacked im2col RHS: shifted copies of x (zero-padded edges) ----
    col = lax.broadcasted_iota(jnp.int32, (C_in, T), 1)
    taps = []
    for k in range(K):
        off = k - pad                                       # out[:, t] = x[:, t + off]
        if off == 0:
            taps.append(x)
        else:
            rolled = pltpu.roll(x, shift=(-off) % T, axis=1)  # XLU lane rotate
            if off < 0:
                taps.append(jnp.where(col >= -off, rolled, 0.0))
            else:
                taps.append(jnp.where(col <= T - 1 - off, rolled, 0.0))
    x_stk = jnp.concatenate(taps, axis=0) if K > 1 else taps[0]   # (K*C_in, T)

    # ---- Conv1d as a single MXU matmul (bias folded in later) ----
    acc = jnp.dot(w_ref[...], x_stk, preferred_element_type=jnp.float32)  # (C_out, T)

    # ---- GroupNorm statistics (bias folded analytically) ----
    bias = p_ref[:, :, 0:1].astype(jnp.float32)             # (G, gs, 1)
    gamma = p_ref[:, :, 1:2].astype(jnp.float32)
    beta = p_ref[:, :, 2:3].astype(jnp.float32)

    ch_sum = jnp.sum(acc, axis=1, keepdims=True)            # (C_out, 1)  lane reduce
    ch_sqsum = jnp.sum(acc * acc, axis=1, keepdims=True)    # (C_out, 1)

    # leading-dim split only -> layout-trivial reshapes
    ch_sum3 = ch_sum.reshape(G, gs, 1)
    ch_sqsum3 = ch_sqsum.reshape(G, gs, 1)

    tT = float(T)
    z_sum = ch_sum3 + tT * bias                             # stats of (Wx + b)
    z_sqsum = ch_sqsum3 + 2.0 * bias * ch_sum3 + tT * bias * bias

    n = float(gs * T)
    g_mean = jnp.sum(z_sum, axis=1, keepdims=True) / n      # (G, 1, 1)
    g_var = jnp.sum(z_sqsum, axis=1, keepdims=True) / n - g_mean * g_mean
    g_var = jnp.maximum(g_var, 0.0)                         # guard cancellation
    inv_std = lax.rsqrt(g_var + eps)                        # (G, 1, 1)

    # fused affine: y = acc * s + t
    s3 = gamma * inv_std                                    # (G, gs, 1)
    t3 = (bias - g_mean) * s3 + beta                        # (G, gs, 1)
    s2 = s3.reshape(C_out, 1)                               # leading-dim merge
    t2 = t3.reshape(C_out, 1)

    # ---- scale/shift + ReLU (Dropout p=0 is identity) ----
    y = jnp.maximum(acc * s2 + t2, 0.0)
    o_ref[0] = y.astype(o_ref.dtype)


def conv_block(x, weight, bias, gamma, beta, *, num_groups, eps=1e-5):
    """x: [B, C_in, T] -> [B, C_out, T]  (Conv1d k odd, s=1, 'same' -> GroupNorm -> ReLU)."""
    B, C_in, T = x.shape
    C_out, _, K = weight.shape
    assert K % 2 == 1, "only odd kernel sizes ('same' padding) supported"
    assert C_out % num_groups == 0, "channels must be divisible by num_groups"
    gs = C_out // num_groups

    # Host-side (cheap, one-time) parameter re-packing:
    #   W2[o, k*C_in + i] = weight[o, i, k]   (matches in-kernel tap stacking order)
    w2 = jnp.transpose(weight, (0, 2, 1)).reshape(C_out, K * C_in)
    params = jnp.stack([bias, gamma, beta], axis=-1).reshape(num_groups, gs, 3)

    kernel = functools.partial(conv_gn_relu_kernel, num_groups=num_groups, eps=eps)

    return pl.pallas_call(
        kernel,
        out_shape=jax.ShapeDtypeStruct((B, C_out, T), x.dtype),
        grid_spec=pltpu.PrefetchScalarGridSpec(
            num_scalar_prefetch=0,
            grid=(B,),
            in_specs=[
                pl.BlockSpec((1, C_in, T), lambda b: (b, 0, 0)),
                pl.BlockSpec((C_out, K * C_in), lambda b: (0, 0)),
                pl.BlockSpec((num_groups, gs, 3), lambda b: (0, 0, 0)),
            ],
            out_specs=pl.BlockSpec((1, C_out, T), lambda b: (b, 0, 0)),
        ),
        compiler_params=pltpu.CompilerParams(
            dimension_semantics=("parallel",)),
    )(x, w2, params)


def reference(x, weight, bias, gamma, beta, *, num_groups, eps=1e-5):
    """Pure-JAX reference for correctness checking."""
    B, C_in, T = x.shape
    C_out, _, K = weight.shape
    pad = (K - 1) // 2
    x_pad = jnp.pad(x, ((0, 0), (0, 0), (pad, pad)))
    y = jnp.zeros((B, C_out, T), jnp.float32)
    for k in range(K):
        y = y + jnp.einsum('oi,bit->bot', weight[:, :, k], x_pad[:, :, k:k + T])
    y = y + bias[None, :, None]
    gs = C_out // num_groups
    yg = y.reshape(B, num_groups, gs * T)
    mean = yg.mean(axis=-1, keepdims=True)
    var = yg.var(axis=-1, keepdims=True)
    yn = ((yg - mean) / jnp.sqrt(var + eps)).reshape(B, C_out, T)
    yn = yn * gamma[None, :, None] + beta[None, :, None]
    return jnp.maximum(yn, 0.0)


if __name__ == "__main__":
    # Small shapes consistent with ConvBlock(idim, n_chans, kernel_size=3, norm='gn').
    # T chosen as a multiple of 128 so the output block is lane-dense.
    B, C_in, C_out, T, K = 2, 16, 32, 128, 3
    num_groups = C_out // 16  # GroupNorm(n_chans // 16, n_chans) -> group size 16

    key = jax.random.PRNGKey(0)
    kx, kw, kb = jax.random.split(key, 3)

    x = jax.random.normal(kx, (B, C_in, T), dtype=jnp.float32)

    # Xavier-uniform init (gain for 'linear' = 1), like torch.nn.init.xavier_uniform_
    fan_in, fan_out = C_in * K, C_out * K
    limit = (6.0 / (fan_in + fan_out)) ** 0.5
    weight = jax.random.uniform(kw, (C_out, C_in, K), jnp.float32, -limit, limit)
    # Conv1d default bias init: U(-1/sqrt(fan_in), 1/sqrt(fan_in))
    b_bound = 1.0 / (fan_in ** 0.5)
    bias = jax.random.uniform(kb, (C_out,), jnp.float32, -b_bound, b_bound)
    # GroupNorm affine defaults
    gamma = jnp.ones((C_out,), jnp.float32)
    beta = jnp.zeros((C_out,), jnp.float32)

    out = conv_block(x, weight, bias, gamma, beta, num_groups=num_groups)
    out = jax.block_until_ready(out)

    ref = reference(x, weight, bias, gamma, beta, num_groups=num_groups)
    assert out.shape == (B, C_out, T)
    err = jnp.max(jnp.abs(out - ref))
    assert jnp.allclose(out, ref, atol=1e-4, rtol=1e-4), f"max err {err}"

    print("KERNEL_OK")
</pallas_src>

<mosaic_0001>
module attributes {stable_mosaic.version = 11 : i64} {
  func.func @conv_gn_relu_kernel(%arg0: i32, %arg1: memref<1x16x128xf32, #tpu.memory_space<vmem>>, %arg2: memref<32x48xf32, #tpu.memory_space<vmem>>, %arg3: memref<2x16x3xf32, #tpu.memory_space<vmem>>, %arg4: memref<1x32x128xf32, #tpu.memory_space<vmem>>) attributes {dimension_semantics = [#tpu.dimension_semantics<parallel>], iteration_bounds = array<i64: 2>, scalar_prefetch = 0 : i64, scratch_operands = 0 : i64, tpu.core_type = #tpu.core_type<tc>, window_params = [{transform_indices = @transform_0, window_bounds = array<i64: 1, 16, 128>}, {pipeline_mode = #tpu.pipeline_mode<synchronous>, transform_indices = @transform_1, window_bounds = array<i64: 32, 48>}, {pipeline_mode = #tpu.pipeline_mode<synchronous>, transform_indices = @transform_2, window_bounds = array<i64: 2, 16, 3>}, {transform_indices = @transform_3, window_bounds = array<i64: 1, 32, 128>}]} {
    %c0 = arith.constant 0 : index
    %c0_0 = arith.constant 0 : index
    %c0_1 = arith.constant 0 : index
    %0 = vector.load %arg1[%c0, %c0_0, %c0_1] : memref<1x16x128xf32, #tpu.memory_space<vmem>>, vector<1x16x128xf32>
    %1 = vector.shape_cast %0 : vector<1x16x128xf32> to vector<16x128xf32>
    %2 = tpu.iota {dimensions = array<i32: 1>} : vector<16x128xi32>
    %c1_i32 = arith.constant 1 : i32
    %3 = tpu.dynamic_rotate %1 by %c1_i32 dim 1 : vector<16x128xf32>, i32 -> vector<16x128xf32>
    %c1_i32_2 = arith.constant 1 : i32
    %4 = vector.broadcast %c1_i32_2 : i32 to vector<16x128xi32>
    %5 = arith.cmpi sge, %2, %4 : vector<16x128xi32>
    %cst = arith.constant 0.000000e+00 : f32
    %6 = vector.broadcast %cst : f32 to vector<16x128xf32>
    %7 = arith.select %5, %3, %6 : vector<16x128xi1>, vector<16x128xf32>
    %c127_i32 = arith.constant 127 : i32
    %8 = tpu.dynamic_rotate %1 by %c127_i32 dim 1 : vector<16x128xf32>, i32 -> vector<16x128xf32>
    %c126_i32 = arith.constant 126 : i32
    %9 = vector.broadcast %c126_i32 : i32 to vector<16x128xi32>
    %10 = arith.cmpi sle, %2, %9 : vector<16x128xi32>
    %cst_3 = arith.constant 0.000000e+00 : f32
    %11 = vector.broadcast %cst_3 : f32 to vector<16x128xf32>
    %12 = arith.select %10, %8, %11 : vector<16x128xi1>, vector<16x128xf32>
    %13 = tpu.concatenate %7, %1, %12 in 0 : vector<16x128xf32>, vector<16x128xf32>, vector<16x128xf32> -> vector<48x128xf32>
    %c0_4 = arith.constant 0 : index
    %c0_5 = arith.constant 0 : index
    %14 = vector.load %arg2[%c0_4, %c0_5] : memref<32x48xf32, #tpu.memory_space<vmem>>, vector<32x48xf32>
    %cst_6 = arith.constant dense<0.000000e+00> : vector<32x128xf32>
    %15 = tpu.matmul %14, %13, %cst_6 {dimension_numbers = #tpu.dot_dimension_numbers<[1], [0], [0], [1], [0, 0, 1, 1], [], []>} : vector<32x48xf32>, vector<48x128xf32>, vector<32x128xf32> -> vector<32x128xf32>
    %c0_7 = arith.constant 0 : index
    %c0_8 = arith.constant 0 : index
    %c0_9 = arith.constant 0 : index
    %16 = vector.load %arg3[%c0_7, %c0_8, %c0_9] : memref<2x16x3xf32, #tpu.memory_space<vmem>>, vector<2x16x1xf32>
    %c0_10 = arith.constant 0 : index
    %c0_11 = arith.constant 0 : index
    %c1 = arith.constant 1 : index
    %17 = vector.load %arg3[%c0_10, %c0_11, %c1] : memref<2x16x3xf32, #tpu.memory_space<vmem>>, vector<2x16x1xf32>
    %c0_12 = arith.constant 0 : index
    %c0_13 = arith.constant 0 : index
    %c2 = arith.constant 2 : index
    %18 = vector.load %arg3[%c0_12, %c0_13, %c2] : memref<2x16x3xf32, #tpu.memory_space<vmem>>, vector<2x16x1xf32>
    %cst_14 = arith.constant dense<0.000000e+00> : vector<32xf32>
    %19 = vector.multi_reduction <add>, %15, %cst_14 [1] : vector<32x128xf32> to vector<32xf32>
    %20 = vector.shape_cast %19 : vector<32xf32> to vector<32x1xf32>
    %21 = arith.mulf %15, %15 : vector<32x128xf32>
    %cst_15 = arith.constant dense<0.000000e+00> : vector<32xf32>
    %22 = vector.multi_reduction <add>, %21, %cst_15 [1] : vector<32x128xf32> to vector<32xf32>
    %23 = vector.shape_cast %22 : vector<32xf32> to vector<32x1xf32>
    %24 = vector.shape_cast %20 : vector<32x1xf32> to vector<2x16x1xf32>
    %25 = vector.shape_cast %23 : vector<32x1xf32> to vector<2x16x1xf32>
    %cst_16 = arith.constant 1.280000e+02 : f32
    %26 = vector.broadcast %cst_16 : f32 to vector<2x16x1xf32>
    %27 = arith.mulf %26, %16 : vector<2x16x1xf32>
    %28 = arith.addf %24, %27 : vector<2x16x1xf32>
    %cst_17 = arith.constant 2.000000e+00 : f32
    %29 = vector.broadcast %cst_17 : f32 to vector<2x16x1xf32>
    %30 = arith.mulf %29, %16 : vector<2x16x1xf32>
    %31 = arith.mulf %30, %24 : vector<2x16x1xf32>
    %32 = arith.addf %25, %31 : vector<2x16x1xf32>
    %cst_18 = arith.constant 1.280000e+02 : f32
    %33 = vector.broadcast %cst_18 : f32 to vector<2x16x1xf32>
    %34 = arith.mulf %33, %16 : vector<2x16x1xf32>
    %35 = arith.mulf %34, %16 : vector<2x16x1xf32>
    %36 = arith.addf %32, %35 : vector<2x16x1xf32>
    %cst_19 = arith.constant dense<0.000000e+00> : vector<2x1xf32>
    %37 = vector.multi_reduction <add>, %28, %cst_19 [1] : vector<2x16x1xf32> to vector<2x1xf32>
    %38 = vector.shape_cast %37 : vector<2x1xf32> to vector<2x1x1xf32>
    %cst_20 = arith.constant 2.048000e+03 : f32
    %39 = vector.broadcast %cst_20 : f32 to vector<2x1x1xf32>
    %40 = arith.divf %38, %39 : vector<2x1x1xf32>
    %cst_21 = arith.constant dense<0.000000e+00> : vector<2x1xf32>
    %41 = vector.multi_reduction <add>, %36, %cst_21 [1] : vector<2x16x1xf32> to vector<2x1xf32>
    %42 = vector.shape_cast %41 : vector<2x1xf32> to vector<2x1x1xf32>
    %cst_22 = arith.constant 2.048000e+03 : f32
    %43 = vector.broadcast %cst_22 : f32 to vector<2x1x1xf32>
    %44 = arith.divf %42, %43 : vector<2x1x1xf32>
    %45 = arith.mulf %40, %40 : vector<2x1x1xf32>
    %46 = arith.subf %44, %45 : vector<2x1x1xf32>
    %cst_23 = arith.constant 0.000000e+00 : f32
    %47 = vector.broadcast %cst_23 : f32 to vector<2x1x1xf32>
    %48 = arith.maximumf %46, %47 : vector<2x1x1xf32>
    %cst_24 = arith.constant 9.99999974E-6 : f32
    %49 = vector.broadcast %cst_24 : f32 to vector<2x1x1xf32>
    %50 = arith.addf %48, %49 : vector<2x1x1xf32>
    %51 = math.rsqrt %50 : vector<2x1x1xf32>
    %52 = vector.broadcast %51 : vector<2x1x1xf32> to vector<2x16x1xf32>
    %53 = arith.mulf %17, %52 : vector<2x16x1xf32>
    %54 = vector.broadcast %40 : vector<2x1x1xf32> to vector<2x16x1xf32>
    %55 = arith.subf %16, %54 : vector<2x16x1xf32>
    %56 = arith.mulf %55, %53 : vector<2x16x1xf32>
    %57 = arith.addf %56, %18 : vector<2x16x1xf32>
    %58 = vector.shape_cast %53 : vector<2x16x1xf32> to vector<32x1xf32>
    %59 = vector.shape_cast %57 : vector<2x16x1xf32> to vector<32x1xf32>
    %60 = vector.broadcast %58 : vector<32x1xf32> to vector<32x128xf32>
    %61 = arith.mulf %15, %60 : vector<32x128xf32>
    %62 = vector.broadcast %59 : vector<32x1xf32> to vector<32x128xf32>
    %63 = arith.addf %61, %62 : vector<32x128xf32>
    %cst_25 = arith.constant 0.000000e+00 : f32
    %64 = vector.broadcast %cst_25 : f32 to vector<32x128xf32>
    %65 = arith.maximumf %63, %64 : vector<32x128xf32>
    %c0_26 = arith.constant 0 : index
    %c0_27 = arith.constant 0 : index
    %c0_28 = arith.constant 0 : index
    %66 = vector.load %arg4[%c0_26, %c0_27, %c0_28] : memref<1x32x128xf32, #tpu.memory_space<vmem>>, vector<1x32x128xf32>
    %67 = vector.shape_cast %66 : vector<1x32x128xf32> to vector<32x128xf32>
    %68 = vector.shape_cast %65 : vector<32x128xf32> to vector<1x32x128xf32>
    tpu.vector_store %arg4[%c0_26, %c0_27, %c0_28], %68 {strides = array<i32>} : memref<1x32x128xf32, #tpu.memory_space<vmem>>, vector<1x32x128xf32>,
    return
  }
  func.func @transform_0(%arg0: i32) -> (i32, i32, i32) {
    %c0_i32 = arith.constant 0 : i32
    %c0_i32_0 = arith.constant 0 : i32
    %c0_i32_1 = arith.constant 0 : i32
    return %arg0, %c0_i32, %c0_i32_0 : i32, i32, i32
  }
  func.func @transform_1(%arg0: i32) -> (i32, i32) {
    %c0_i32 = arith.constant 0 : i32
    %c0_i32_0 = arith.constant 0 : i32
    %c0_i32_1 = arith.constant 0 : i32
    return %c0_i32, %c0_i32_0 : i32, i32
  }
  func.func @transform_2(%arg0: i32) -> (i32, i32, i32) {
    %c0_i32 = arith.constant 0 : i32
    %c0_i32_0 = arith.constant 0 : i32
    %c0_i32_1 = arith.constant 0 : i32
    %c0_i32_2 = arith.constant 0 : i32
    return %c0_i32, %c0_i32_0, %c0_i32_1 : i32, i32, i32
  }
  func.func @transform_3(%arg0: i32) -> (i32, i32, i32) {
    %c0_i32 = arith.constant 0 : i32
    %c0_i32_0 = arith.constant 0 : i32
    %c0_i32_1 = arith.constant 0 : i32
    return %arg0, %c0_i32, %c0_i32_0 : i32, i32, i32
  }
}

</mosaic_0001>

<bundles_post_ra>
// kernel: tpu_custom_call.1
= control target key start
LH: loop header
LB: loop body
LE: loop exit
PB: predicated region body
PF: predicated region fallthrough
CT: control target
= control target key end

     0   :  { %8 = vsyncpa [#allocation3], 0  ;;  %s1074_s0 = inlined_call_operand.vmem [shape: f32[2,16,128], index: 0, kind: input, shape index: {}]   ;;  %s1075_s1 = inlined_call_operand.hbm [shape: f32[32,48], index: 1, kind: input, shape index: {}]   ;;  %s1076_s2 = inlined_call_operand.vmem [shape: f32[2,16,3], index: 2, kind: input, shape index: {}]   ;;  %s1077_s3 = inlined_call_operand.hbm [shape: f32[2,32,128], index: 3, kind: output, shape index: {}]  }
   0x1   :  { %9 = vsyncpa [#allocation4], 0 }
   0x2   :  { %11 = vsyncpa [#allocation4 + $0x1], 0  ;;  %s858_s12 = smov 0   ;;  %s860_s13 = smov 0  }
   0x3   :  { %s862_s14 = smov 0   ;;  %s864_s15 = smov 0  }
   0x4 LB: > { %s879_s16 = sadd.s32 4294967295, %s825_s15   ;;  %s604_s17 = sadd.s32 4294967294, %s825_s15   ;;  %s825_s15 = sphi %s864_s15, %s1085_s15   ;;  %s821_s14 = sphi %s862_s14, %s1084_s14   ;;  %s817_s13 = sphi %s860_s13, %s1083_s13   ;;  %s813_s12 = sphi %s858_s12, %s1082_s12  }
   0x5   : > { %s883_s18 = sadd.s32 1, %s825_s15   ;;  %s92_s19 = sadd.s32 1, %s821_s14 }
   0x6   : > { %s89_s20 = ssub.s32 %s825_s15, %s883_s18  ;;  %p102_p0 = scmp.ne.s32.totalorder %s821_s14, %s817_s13 }
   0x7   : > { %p90_p1 = scmp.eq.s32.totalorder %s89_s20, 0  ;;  %p103_p2 = scmp.eq.s32.totalorder %s879_s16, 1 }
   0x8   : > { %p108_p3 = scmp.ne.s32.totalorder %s817_s13, %s813_s12  ;;  %p109_p4 = scmp.eq.s32.totalorder %s604_s17, 1 }
   0x9   : > { %s894_s21 = scalar_select %p90_p1, %s821_s14, %s92_s19  }
   0xa   : > { %p896_p5 = por %p103_p2, %p102_p0  ;;  %p900_p6 = por %p109_p4, %p108_p3 }
   0xb   : > { %p605_p7 = scmp.ge.s32.totalorder %s825_s15, 1  ;;  %p116_p8 = scmp.lt.s32.totalorder %s825_s15, 3 }
   0xc   : > { %s1079_s23 = scalar_select %p900_p6, 1, 0 }
   0xd   : > { %p682_p9 = scmp.eq.s32.totalorder %s879_s16, 0  ;;  %p907_p10 = pnand %p605_p7, %p116_p8 }
   0xe   : > { %s827_s25 = smov [#allocation2]  }
   0xf   : > { %s128_s26 = sshll.u32 %s827_s25, 4  ;;  %p674_p11 = pneg %p907_p10  ;;  %s129_s26 = int_to_ptr.vmem [resolvable:$true] %s128_s26 }
  0x10   : > { %s746_s27 = scalar_lea.vmem %s129_s26, 512  ;;  %p754_p3 = scmp.lt.s32.totalorder %s129_s26, %s129_s26 }
  0x11   : > { %p675_p12 = pnand %p682_p9, %p674_p11  ;;  %p747_p0 = scmp.ne.s32.totalorder %s129_s26, %s746_s27 }
  0x12   : > { %p755_p4 = scmp.lt.s32.totalorder %s746_s27, %s746_s27 }
  0x13   : > { %p737_p13 = pneg %p675_p12 }
  0x14   : > { %p756_p6 = por %p755_p4, %p754_p3 }
  0x15   : > { %p749_p1 = pnand %p747_p0, %p737_p13 }
  0x17   : > { %p750_p2 = pneg %p749_p1 }
  0x19   : > { %p757_p7 = pnand %p756_p6, %p750_p2 }
  0x1b   : > { %760 = shalt.err (!%p757_p7)
}
  0x1c   : > { %s828_s28 = smov 128   ;;  %s829_s29 = smov 8  }
  0x1d   : > { %677 = dma.hbm_to_vmem [thread:$0]  (!%p675_p12), %s1075_s1, 512, %s129_s26, [#allocation3], %s828_s28, %s828_s28, %s829_s29  }
  0x1e   : > { %155 = sbr.rel (%p907_p10) target bundleno = 944 (0x3b0), region = 32 }
  0x23   : > { %804 = dma.done.wait (%p682_p9), [#allocation3], 512  }
  0x24   : > { %806 = vsyncadd (%p682_p9), [#allocation3], 4294966784  ;;  %p179_p8 = scmp.lt.s32.totalorder %s879_s16, 1  ;;  %v202_v1 = vld [vmem:[#allocation2] sm:$0xff]  ;;  %vm206_vm0 = vcmask 392192   ;;  %s830_s10 = smov 127   ;;  %v186_v4 = vlaneseq }
  0x25   : > { %s831_s11 = smov 1   ;;  %v204_v2 = vld [vmem:[#allocation2 + $0x10] sm:$0xff]  ;;  %650 = vmatprep.mubr.msk.f32.mxu0 %vm206_vm0, %v202_v1  ;;  %v203_v10 = vld [vmem:[#allocation2 + $0x8] sm:$0xff]  ;;  %v205_v11 = vld [vmem:[#allocation2 + $0x18] sm:$0xff]  ;;  %vm356_vm3 = vcmask 7168   ;;  %s833_s29 = smov 126  }
  0x26   : > { %s180_s5 = scalar_select %p179_p8, %s879_s16, 1  ;;  %653 = vmatprep.mubr.msk.f32.mxu1 %vm206_vm0, %v204_v2  ;;  %v187_v5 = vand.u32 127, %v186_v4  ;;  %v960_v20 = vld [vmem:[%s1076_s2 + $0x8] sm:$0xff]  ;;  %v965_v21 = vld [vmem:[%s1076_s2] sm:$0xff]  ;;  %v971_v23 = vld [vmem:[%s1076_s2 + $0x18] sm:$0xff] }
  0x27   : > { %v329_v22 = vmul.f32 128.0, %v960_v20  ;;  %v328_v26 = vmul.f32 128.0, %v965_v21  ;;  %v336_v27 = vmul.f32 2.0, %v965_v21  ;;  %v978_v28 = vld [vmem:[%s1076_s2 + $0x10] sm:$0xff]  ;;  %v331_v29 = vmul.f32 128.0, %v971_v23  ;;  %s176_s30 = sand.u32 1, %s817_s13  }
  0x28   : > { %s626_s6 = sshll.u32 %s180_s5, 4  ;;  %vm199_vm1 = vcmp.le.s32.totalorder %v187_v5, 126  ;;  %vm192_vm2 = vcmp.ge.s32.totalorder %v187_v5, 1  ;;  %v330_v34 = vmul.f32 128.0, %v978_v28  ;;  %v338_v35 = vmul.f32 2.0, %v978_v28  ;;  %s610_s4 = sshll.u32 %s176_s30, 5 }
  0x29   : > { %s183_s9 = scalar_lea.vmem %s1074_s0, %s626_s6  ;;  %v337_v38 = vmul.f32 2.0, %v960_v20  ;;  %v348_v43 = vmul.f32 %v328_v26, %v965_v21  ;;  %v339_v47 = vmul.f32 2.0, %v971_v23  ;;  %v349_v52 = vmul.f32 %v329_v22, %v960_v20  ;;  %s178_s5 = scalar_lea.vmem [#allocation5], %s610_s4 }
  0x2a   : > { %v185_v0 = vld [vmem:[%s183_s9 + $0x8] sm:$0xff]  ;;  %v184_v3 = vld [vmem:[%s183_s9] sm:$0xff]  ;;  %v350_v58 = vmul.f32 %v330_v34, %v978_v28  ;;  %v351_v1 = vmul.f32 %v331_v29, %v971_v23  ;;  %s530_s6 = sshll.u32 %s178_s5, 4  ;;  %s627_s7 = sshll.u32 %s879_s16, 9  ;;  %s1027_s6 = int_to_ptr.vmem [resolvable:$true] %s530_s6 }
  0x2b   : > { %197 = vrot.lane.b32.xlu0 %v185_v0, %s830_s10  ;;  %190 = vrot.lane.b32.xlu1 %v185_v0, %s831_s11  ;;  %s761_s17 = scalar_lea.vmem %s1027_s6, 512  ;;  %s835_s16 = smov [#allocation5]  }
  0x2c   : > { %p762_p6 = scmp.ne.s32.totalorder %s1027_s6, %s761_s17  ;;  %s765_s19 = sshll.u32 %s835_s16, 4  ;;  %s766_s19 = int_to_ptr.vmem [resolvable:$false] %s765_s19 }
  0x2d   : > { %s767_s20 = scalar_lea.vmem %s766_s19, 1024  ;;  %p768_p11 = scmp.lt.s32.totalorder %s1027_s6, %s766_s19 }
  0x2e   : > { %p763_p9 = pnand %p762_p6, %p896_p5  ;;  %p769_p12 = scmp.lt.s32.totalorder %s767_s20, %s761_s17 }
  0x2f   : > { %195 = vrot.lane.b32.xlu0 %v184_v3, %s830_s10  ;;  %188 = vrot.lane.b32.xlu1 %v184_v3, %s831_s11 }
  0x30   : > { %p764_p10 = pneg %p763_p9  ;;  %p770_p13 = por %p769_p12, %p768_p11 }
  0x32   : > { %p771_p0 = pnand %p770_p13, %p764_p10 }
  0x9d   : > { %v198_v6 = vpop.permute.xlu0 %197  ;;  %v191_v8 = vpop.permute.xlu1 %190 }
  0x9e   : > { %638 = vmatprep.subr.msk.mxu0 %vm199_vm1, %v198_v6  ;;  %656 = vmatprep.subr.msk.mxu1 %vm199_vm1, %v198_v6 }
  0x9f   : > { %639 = vmatpush3.msk.msra.mxu0 %vm199_vm1, %v198_v6  ;;  %662 = vmatpush3.msk.msra.mxu1 %vm199_vm1, %v198_v6 }
  0xa1   : > { %v196_v7 = vpop.permute.xlu0 %195  ;;  %v189_v9 = vpop.permute.xlu1 %188 }
  0xa2   : > { %640 = vmatprep.subr.msk.mxu0 %vm199_vm1, %v196_v7  ;;  %657 = vmatprep.subr.msk.mxu1 %vm199_vm1, %v196_v7 }
  0xa3   : > { %641 = vmatpush3.msk.msra.mxu0 %vm199_vm1, %v196_v7  ;;  %663 = vmatpush3.msk.msra.mxu1 %vm199_vm1, %v196_v7 }
  0xa4   : > { %642 = vmatprep.subr.mxu0 %v185_v0  ;;  %658 = vmatprep.subr.mxu1 %v185_v0 }
  0xa5   : > { %643 = vmatpush3.msra.mxu0 %v185_v0  ;;  %664 = vmatpush3.msra.mxu1 %v185_v0 }
  0xa6   : > { %644 = vmatprep.subr.mxu0 %v184_v3  ;;  %659 = vmatprep.subr.mxu1 %v184_v3 }
  0xa7   : > { %645 = vmatpush3.msra.mxu0 %v184_v3  ;;  %665 = vmatpush3.msra.mxu1 %v184_v3 }
  0xa8   : > { %646 = vmatprep.subr.msk.mxu0 %vm192_vm2, %v191_v8  ;;  %660 = vmatprep.subr.msk.mxu1 %vm192_vm2, %v191_v8 }
  0xa9   : > { %647 = vmatpush3.msk.msra.mxu0 %vm192_vm2, %v191_v8  ;;  %666 = vmatpush3.msk.msra.mxu1 %vm192_vm2, %v191_v8 }
  0xaa   : > { %648 = vmatprep.subr.msk.mxu0 %vm192_vm2, %v189_v9  ;;  %661 = vmatprep.subr.msk.mxu1 %vm192_vm2, %v189_v9 }
  0xab   : > { %649 = vmatpush3.msk.msra.mxu0 %vm192_vm2, %v189_v9  ;;  %667 = vmatpush3.msk.msra.mxu1 %vm192_vm2, %v189_v9 }
  0xac   : > { %651 = vmatmul.mubr.msk.f32.vlgmr.msra.gmra.mxu0 %vm206_vm0, %v203_v10  ;;  %654 = vmatmul.mubr.msk.f32.vlgmr.msra.gmra.mxu1 %vm206_vm0, %v205_v11 }
 0x16c   : > { %v937_v12 = vpop.f32.mrf.mxu0  ;;  %v939_v13 = vpop.f32.mrf.mxu1 }
 0x16d   : > { %314 = vadd.xlane.f32.xlu0 %v939_v13  ;;  %310 = vadd.xlane.f32.xlu1 %v937_v12  ;;  %v317_v18 = vmul.f32 %v937_v12, %v937_v12  ;;  %v319_v19 = vmul.f32 %v939_v13, %v939_v13 }
 0x16e   : > { %v943_v14 = vpop.f32.mrf.mxu0  ;;  %v947_v16 = vpop.f32.mrf.mxu1 }
 0x16f   : > { %v316_v15 = vmul.f32 %v943_v14, %v943_v14  ;;  %v318_v17 = vmul.f32 %v947_v16, %v947_v16 }
 0x171   : > { %308 = vadd.xlane.f32.xlu0 %v943_v14  ;;  %320 = vadd.xlane.f32.xlu1 %v316_v15 }
 0x175   : > { %312 = vadd.xlane.f32.xlu0 %v947_v16  ;;  %324 = vadd.xlane.f32.xlu1 %v318_v17 }
 0x179   : > { %322 = vadd.xlane.f32.xlu0 %v317_v18 }
 0x17d   : > { %326 = vadd.xlane.f32.xlu0 %v319_v19 }
 0x1f6   : > { %v315_v24 = vpop.xlane.xlu0 %314  ;;  %v311_v25 = vpop.xlane.xlu1 %310 }
 0x1f7   : > { %v333_v30 = vadd.f32 %v329_v22, %v311_v25  ;;  %v335_v37 = vadd.f32 %v331_v29, %v315_v24  ;;  %v341_v50 = vmul.f32 %v337_v38, %v311_v25  ;;  %v343_v63 = vmul.f32 %v339_v47, %v315_v24 }
 0x1f9   : > { %v358_v39 = vsel %vm356_vm3, %v333_v30, 0.0  ;;  %v367_v49 = vsel %vm356_vm3, %v335_v37, 0.0 }
 0x1fa   : > { %v309_v31 = vpop.xlane.xlu0 %308  ;;  %v321_v36 = vpop.xlane.xlu1 %320 }
 0x1fb   : > { %v332_v32 = vadd.f32 %v328_v26, %v309_v31  ;;  %v340_v33 = vmul.f32 %v336_v27, %v309_v31 }
 0x1fd   : > { %v357_v40 = vsel %vm356_vm3, %v332_v32, 0.0  ;;  %v344_v44 = vadd.f32 %v340_v33, %v321_v36 }
 0x1fe   : > { %v359_v41 = vadd.f32 %v358_v39, %v357_v40  ;;  %v313_v42 = vpop.xlane.xlu0 %312  ;;  %v325_v55 = vpop.xlane.xlu1 %324 }
 0x1ff   : > { %v334_v45 = vadd.f32 %v330_v34, %v313_v42  ;;  %v342_v46 = vmul.f32 %v338_v35, %v313_v42  ;;  %v352_v57 = vadd.f32 %v348_v43, %v344_v44 }
 0x200   : > { %v360_v48 = vrot.slane %v359_v41, 4 }
 0x201   : > { %v366_v51 = vsel %vm356_vm3, %v334_v45, 0.0  ;;  %v346_v59 = vadd.f32 %v342_v46, %v325_v55  ;;  %v378_v5 = vsel %vm356_vm3, %v352_v57, 0.0 }
 0x202   : > { %v361_v53 = vadd.f32 %v360_v48, %v359_v41  ;;  %v368_v54 = vadd.f32 %v367_v49, %v366_v51  ;;  %v323_v56 = vpop.xlane.xlu0 %322 }
 0x203   : > { %v345_v60 = vadd.f32 %v341_v50, %v323_v56  ;;  %v354_v6 = vadd.f32 %v350_v58, %v346_v59 }
 0x204   : > { %v362_v61 = vrot.slane %v361_v53, 2  ;;  %v369_v62 = vrot.slane %v368_v54, 4 }
 0x205   : > { %v353_v0 = vadd.f32 %v349_v52, %v345_v60  ;;  %v387_v19 = vsel %vm356_vm3, %v354_v6, 0.0  ;;  %v832_v52 = vmov 1  }
 0x206   : > { %v363_v2 = vadd.f32 %v362_v61, %v361_v53  ;;  %v370_v3 = vadd.f32 %v369_v62, %v368_v54  ;;  %v327_v4 = vpop.xlane.xlu0 %326  ;;  %727 = vset.pattern.permute.xlu0 %v832_v52  ;;  %728 = vset.pattern.permute.xlu1 %v832_v52  ;;  %v834_v61 = vmov 0  }
 0x207   : > { %v379_v7 = vsel %vm356_vm3, %v353_v0, 0.0  ;;  %v347_v8 = vadd.f32 %v343_v63, %v327_v4 }
 0x208   : > { %v371_v9 = vrot.slane %v370_v3, 2  ;;  %v380_v10 = vadd.f32 %v379_v7, %v378_v5  ;;  %v364_v15 = vrot.slane %v363_v2, 1 }
 0x209   : > { %v355_v11 = vadd.f32 %v351_v1, %v347_v8 }
 0x20a   : > { %v372_v17 = vadd.f32 %v371_v9, %v370_v3  ;;  %v381_v18 = vrot.slane %v380_v10, 4  ;;  %v365_v26 = vadd.f32 %v364_v15, %v363_v2 }
 0x20b   : > { %v388_v22 = vsel %vm356_vm3, %v355_v11, 0.0 }
 0x20c   : > { %v382_v24 = vadd.f32 %v381_v18, %v380_v10  ;;  %v389_v25 = vadd.f32 %v388_v22, %v387_v19  ;;  %v373_v27 = vrot.slane %v372_v17, 1  ;;  %v376_v33 = vmul.f32 0.00048828125, %v365_v26 }
 0x20e   : > { %v383_v29 = vrot.slane %v382_v24, 2  ;;  %v390_v30 = vrot.slane %v389_v25, 4  ;;  %v374_v34 = vadd.f32 %v373_v27, %v372_v17  ;;  %v398_v39 = vmul.f32 %v376_v33, %v376_v33 }
 0x20f   : > { %v420_v0 = vsub.f32 %v965_v21, %v376_v33  ;;  %v421_v4 = vsub.f32 %v960_v20, %v376_v33 }
 0x210   : > { %v384_v31 = vadd.f32 %v383_v29, %v382_v24  ;;  %v391_v32 = vadd.f32 %v390_v30, %v389_v25  ;;  %v997_v40 = vmul.f32 0.00048828125, %v374_v34 }
 0x212   : > { %v385_v35 = vrot.slane %v384_v31, 1  ;;  %v392_v36 = vrot.slane %v391_v32, 2  ;;  %v399_v45 = vmul.f32 %v997_v40, %v997_v40  ;;  %v422_v7 = vsub.f32 %v978_v28, %v997_v40 }
 0x214   : > { %v386_v37 = vadd.f32 %v385_v35, %v384_v31  ;;  %v393_v38 = vadd.f32 %v392_v36, %v391_v32 }
 0x216   : > { %v396_v41 = vmul.f32 0.00048828125, %v386_v37  ;;  %v394_v42 = vrot.slane %v393_v38, 1 }
 0x218   : > { %v400_v43 = vsub.f32 %v396_v41, %v398_v39  ;;  %v395_v44 = vadd.f32 %v394_v42, %v393_v38 }
 0x21a   : > { %v402_v46 = vmax.f32 %v400_v43, 0.0  ;;  %v397_v47 = vmul.f32 0.00048828125, %v395_v44 }
 0x21c   : > { %v404_v48 = vadd.f32 1e-05, %v402_v46  ;;  %v401_v49 = vsub.f32 %v397_v47, %v399_v45 }
 0x21e   : > { %731 = vrsqrt.f32 %v404_v48  ;;  %v403_v50 = vmax.f32 %v401_v49, 0.0 }
 0x220   : > { %v405_v51 = vadd.f32 1e-05, %v403_v50 }
 0x222   : > { %733 = vrsqrt.f32 %v405_v51 }
 0x22b   : > { %v732_v53 = vpop.eup %731 }
 0x22c   : > { %410 = vrot.lane.b32.xlu1 %v732_v53, %s831_s11 }
 0x22f   : > { %v734_v54 = vpop.eup %733 }
 0x230   : > { %412 = vrot.lane.b32.xlu0 %v734_v54, %s831_s11  ;;  %450 = vrot.lane.b32.xlu1 %v960_v20, %s833_s29  ;;  %s1034_s11 = scalar_lea.sflag [#allocation4], %s176_s30 }
 0x234   : > { %448 = vrot.lane.b32.xlu0 %v965_v21, %s833_s29 }
 0x29e   : > { %v411_v55 = vpop.permute.xlu1 %410 }
 0x29f   : > { %v416_v56 = vmul.f32 %v411_v55, %v965_v21  ;;  %v417_v58 = vmul.f32 %v411_v55, %v960_v20  ;;  %v423_v21 = vsub.f32 %v971_v23, %v997_v40 }
 0x2a1   : > { %428 = vrot.lane.b32.xlu1 %v416_v56, %s830_s10 }
 0x2a2   : > { %v413_v57 = vpop.permute.xlu0 %412  ;;  %v451_v62 = vpop.permute.xlu1 %450 }
 0x2a3   : > { %v418_v59 = vmul.f32 %v413_v57, %v978_v28  ;;  %v419_v60 = vmul.f32 %v413_v57, %v971_v23 }
 0x2a5   : > { %432 = vrot.lane.b32.xlu0 %v418_v59, %s830_s10  ;;  %430 = vrot.lane.b32.xlu1 %v417_v58, %s830_s10 }
 0x2a6   : > { %v449_v63 = vpop.permute.xlu0 %448 }
 0x2a9   : > { %452 = vrot.lane.b32.xlu0 %v978_v28, %s833_s29  ;;  %434 = vrot.lane.b32.xlu1 %v419_v60, %s830_s10  ;;  %s1032_s10 = scalar_lea.hbm %s1077_s3, %s627_s7 }
 0x2ad   : > { %465 = vperm.xlu0 %727, %v416_v56   ;;  %454 = vrot.lane.b32.xlu1 %v971_v23, %s833_s29 }
 0x2b1   : > { %477 = vperm.xlu0 %727, %v419_v60   ;;  %469 = vperm.xlu1 %728, %v417_v58  }
 0x2b5   : > { %473 = vperm.xlu1 %728, %v418_v59   ;;  %730 = vset.pattern.permute.xlu0 %v834_v61 }
 0x2b9   : > { %729 = vset.pattern.permute.xlu1 %v834_v61 }
 0x313   : > { %v429_v1 = vpop.permute.xlu1 %428 }
 0x314   : > { %v440_v2 = vmul.f32 %v429_v1, %v420_v0 }
 0x316   : > { %v460_v3 = vadd.f32 %v449_v63, %v440_v2 }
 0x317   : > { %v433_v5 = vpop.permute.xlu0 %432  ;;  %v431_v6 = vpop.permute.xlu1 %430 }
 0x318   : > { %v441_v8 = vmul.f32 %v431_v6, %v421_v4  ;;  %486 = vperm.xlu1 %729, %v460_v3   ;;  %v442_v9 = vmul.f32 %v433_v5, %v422_v7 }
 0x31a   : > { %v461_v10 = vadd.f32 %v451_v62, %v441_v8 }
 0x31b   : > { %v453_v11 = vpop.permute.xlu0 %452  ;;  %v435_v15 = vpop.permute.xlu1 %434 }
 0x31c   : > { %v462_v17 = vadd.f32 %v453_v11, %v442_v9  ;;  %491 = vperm.xlu0 %730, %v461_v10   ;;  %v443_v18 = vmul.f32 %v435_v15, %v423_v21 }
 0x31e   : > { %496 = vperm.xlu1 %729, %v462_v17  }
 0x31f   : > { %v455_v20 = vpop.permute.xlu1 %454 }
 0x320   : > { %v463_v19 = vadd.f32 %v455_v20, %v443_v18 }
 0x322   : > { %501 = vperm.xlu1 %729, %v463_v19  }
 0x328   : > { %v466_v24 = vpop.permute.xlu0 %465 }
 0x329   : > { %v480_v25 = vmul.f32 %v466_v24, %v943_v14 }
 0x32c   : > { %v470_v22 = vpop.permute.xlu1 %469  ;;  %v478_v26 = vpop.permute.xlu0 %477 }
 0x32d   : > { %v481_v30 = vmul.f32 %v937_v12, %v470_v22  ;;  %v483_v14 = vmul.f32 %v939_v13, %v478_v26 }
 0x330   : > { %v474_v28 = vpop.permute.xlu1 %473 }
 0x331   : > { %v482_v32 = vmul.f32 %v474_v28, %v947_v16 }
 0x393   : > { %v487_v27 = vpop.permute.xlu1 %486 }
 0x394   : > { %v504_v29 = vadd.f32 %v487_v27, %v480_v25 }
 0x396   : > { %v508_v23 = vmax.f32 %v504_v29, 0.0 }
 0x397   : > { %v492_v31 = vpop.permute.xlu0 %491 }
 0x398   : > { %512 = vst [vmem:[%s178_s5] sm:$0xff] %v508_v23  ;;  %v505_v33 = vadd.f32 %v492_v31, %v481_v30 }
 0x399   : > { %v497_v34 = vpop.permute.xlu1 %496 }
 0x39a   : > { %v509_v35 = vmax.f32 %v505_v33, 0.0  ;;  %v506_v36 = vadd.f32 %v497_v34, %v482_v32 }
 0x39c   : > { %513 = vst [vmem:[%s178_s5 + $0x8] sm:$0xff] %v509_v35  ;;  %v510_v37 = vmax.f32 %v506_v36, 0.0 }
 0x39d   : > { %v502_v38 = vpop.permute.xlu1 %501 }
 0x39e   : > { %514 = vst [vmem:[%s178_s5 + $0x10] sm:$0xff] %v510_v37  ;;  %v507_v12 = vadd.f32 %v502_v38, %v483_v14 }
 0x3a0   : > { %v511_v16 = vmax.f32 %v507_v12, 0.0 }
 0x3a2   : > { %515 = vst [vmem:[%s178_s5 + $0x18] sm:$0xff] %v511_v16 }
 0x3a3   : > { %774 = shalt.err (!%p771_p0)
}
 0x3a4   : > { %s775_s24 = scalar_lea.hbm %s1032_s10, 512  ;;  %s779_s27 = scalar_lea.hbm %s1077_s3, 1024 }
 0x3a5   : > { %p776_p1 = scmp.ne.s32.totalorder %s1032_s10, %s775_s24  ;;  %p780_p4 = scmp.lt.s32.totalorder %s1032_s10, %s1077_s3 }
 0x3a6   : > { %p781_p7 = scmp.lt.s32.totalorder %s779_s27, %s775_s24 }
 0x3a7   : > { %p777_p2 = pnand %p776_p1, %p896_p5 }
 0x3a8   : > { %p782_p8 = por %p781_p7, %p780_p4 }
 0x3a9   : > { %p778_p3 = pneg %p777_p2 }
 0x3ab   : > { %p783_p6 = pnand %p782_p8, %p778_p3 }
 0x3ad   : > { %786 = shalt.err (!%p783_p6)
}
 0x3ae   : > { %s836_s30 = smov 128   ;;  %s837_s4 = smov 8  }
 0x3af   : > { %672 = dma.vmem_to_hbm [thread:$0]  (%p896_p5), %s1027_s6, 512, %s1032_s10, %s1034_s11, %s836_s30, %s836_s30, %s837_s4  }
 0x3b0 PF: > { %p684_p9 = scmp.ge.s32.totalorder %s825_s15, 2  ;;  %s545_s5 = sand.u32 1, %s813_s12  }
 0x3b1   : > { %p1081_p10 = scmp.ne.s32.totalorder %s1079_s23, 0  ;;  %s546_s7 = scalar_lea.sflag [#allocation4], %s545_s5 }
 0x3b3   : > { %p679_p11 = pnand %p684_p9, %p1081_p10 }
 0x3b5   : > { %p680_p12 = pneg %p679_p11 }
 0x3b7   : > { %808 = dma.done.wait (%p680_p12), %s546_s7, 512  }
 0x3b8   : > { %810 = vsyncadd (%p680_p12), %s546_s7, 4294966784  ;;  %p14_p13 = scmp.ge.s32.totalorder %s883_s18, 4   ;;  %s1082_s12 = smov %s817_s13 }
 0x3b9   : > { %s1083_s13 = smov %s821_s14  ;;  %s1084_s14 = smov %s894_s21 }
 0x3ba   : > { %s1085_s15 = smov %s883_s18  ;;  %16 = sbr.rel (!%p14_p13) target bundleno = 4 (0x4), region = 72 }
 0x3bf   :  { %551 = vsyncpa [#allocation3], 1 }
 0x3c0   :  { %553 = vsyncpa [#allocation3 + $0x1], 1 }
 0x3c1   :  { %554 = vsyncpa [#allocation4], 1 }
 0x3c2   :  { %556 = vsyncpa [#allocation4 + $0x1], 1 }

</bundles_post_ra>
